<compile_context>
chip_gen: v5e
topology: v5e:2x2
jax: 0.10.0
libtpu: 0.0.40
codegen_flags: <defaults>
</compile_context>

<pallas_src>
import jax
import jax.numpy as jnp
from jax.experimental import pallas as pl
from jax.experimental.pallas import tpu as pltpu

_LANE = 128


def _elementwise_dtype(weight_dtype):
    """bf16 bias/LeakyReLU on chips with a bf16 VALU (v6e/v7x); f32 otherwise."""
    if weight_dtype != jnp.bfloat16:
        return jnp.float32
    try:
        kind = jax.devices()[0].device_kind.lower()
    except Exception:
        kind = ""
    if any(tag in kind for tag in ("v2", "v3", "v4", "v5")):
        return jnp.float32          # v5e and older: keep elementwise in f32
    return jnp.bfloat16             # v6e / v7x (and default)


def _choose_tile(m_rows, hidden):
    """Pick the lane tile (multiple of 128) and the padded row count."""
    m128 = pl.cdiv(m_rows, _LANE) * _LANE
    # (a) Big tiles amortize the ~0.35us/step pipeline overhead and make each
    #     x-row DMA contiguous, but cap so the per-layer live activation set
    #     (~10*H*tile bytes: f32 MXU result + bf16 copy + h) stays <= ~512 KiB
    #     and does not spill (64 vregs everywhere, single vst slot on v5e).
    act_cap = max(_LANE, ((512 << 10) // max(1, 10 * hidden)) // _LANE * _LANE)
    tile = min(2048, act_cap, m128)
    # (b) v7x megacore: the "parallel" grid axis is the only cross-core shard,
    #     so keep >=2 grid steps (>=4 when there is plenty of work).
    if m128 >= 16 * _LANE:
        target_steps = 4
    elif m128 >= 2 * _LANE:
        target_steps = 2
    else:
        target_steps = 1
    split_cap = max(_LANE, (m128 // target_steps) // _LANE * _LANE)
    tile = min(tile, split_cap)
    m_pad = pl.cdiv(m_rows, tile) * tile     # pad rows up to the chosen tile
    return tile, m_pad


def _mlp_body(x_ref, w0_ref, b0_ref, wh_ref, bh_ref, wo_ref, bo_ref, o_ref,
              *, num_hidden, negative_slope, ew_dtype):
    """Transposed shared-MLP forward for one lane tile of patch rows.

    x_ref : (patch_size, TILE_M) bf16        w0_ref: (H, patch_size) bf16
    b0_ref: (H, 1) ew_dtype                  wh_ref: (L, H, H) bf16 (L > 0 only)
    bh_ref: (L, H, 1) ew_dtype               wo_ref: (H, 1) f32
    bo_ref: (1, 1) f32 in SMEM               o_ref : (1, TILE_M) f32
    """
    wdt = w0_ref.dtype

    def act(acc_f32, bias):
        h = acc_f32.astype(ew_dtype) + bias              # VPU (bf16 on v6e/v7x)
        return jnp.where(h > 0, h, h * negative_slope)   # LeakyReLU(0.2)

    h = act(jnp.dot(w0_ref[...], x_ref[...],
                    preferred_element_type=jnp.float32), b0_ref[...])
    for l in range(num_hidden):                          # static -> unrolled
        h = act(jnp.dot(wh_ref[l], h.astype(wdt),
                        preferred_element_type=jnp.float32), bh_ref[l])
    # Final Linear(H, 1): a result-M=1 MXU matmul wastes the array and adds an
    # MXU push/pop on the strictly sequential layer chain -- use a VPU multiply
    # plus a cross-sublane (XLU) reduction in f32 instead.
    out = jnp.sum(wo_ref[...] * h.astype(jnp.float32), axis=0, keepdims=True)
    o_ref[...] = (out + bo_ref[0, 0]).astype(o_ref.dtype)


def _make_kernel(num_hidden, negative_slope, ew_dtype):
    if num_hidden > 0:
        def kernel(x_ref, w0_ref, b0_ref, wh_ref, bh_ref, wo_ref, bo_ref, o_ref):
            _mlp_body(x_ref, w0_ref, b0_ref, wh_ref, bh_ref, wo_ref, bo_ref,
                      o_ref, num_hidden=num_hidden,
                      negative_slope=negative_slope, ew_dtype=ew_dtype)
    else:
        def kernel(x_ref, w0_ref, b0_ref, wo_ref, bo_ref, o_ref):
            _mlp_body(x_ref, w0_ref, b0_ref, None, None, wo_ref, bo_ref,
                      o_ref, num_hidden=0, negative_slope=negative_slope,
                      ew_dtype=ew_dtype)
    return kernel


def init_params(key, num_patches, patch_size, hidden_size, num_layers,
                weight_dtype=jnp.bfloat16):
    """PyTorch-default-like init (U[-1/sqrt(fan_in), +1/sqrt(fan_in)]).

    Matmul weights are stored transposed (out_features, in_features) in
    `weight_dtype` (pass jnp.float32 for strict precision parity with an f32
    PyTorch module); the final Linear(H,1) weight is kept as an f32 column
    (H, 1) and all biases stay f32 (cast to the elementwise dtype at call
    time).
    """
    def lin(k, fan_in, fan_out):
        kw, kb = jax.random.split(k)
        bound = 1.0 / float(fan_in) ** 0.5
        w = jax.random.uniform(kw, (fan_in, fan_out), jnp.float32, -bound, bound)
        b = jax.random.uniform(kb, (fan_out,), jnp.float32, -bound, bound)
        return w, b

    keys = jax.random.split(key, num_layers + 1)
    w0, b0 = lin(keys[0], patch_size, hidden_size)
    wh_list, bh_list = [], []
    for i in range(num_layers - 1):
        w, b = lin(keys[1 + i], hidden_size, hidden_size)
        wh_list.append(w)
        bh_list.append(b)
    wo, bo = lin(keys[num_layers], hidden_size, 1)

    L = num_layers - 1
    if L > 0:
        wh_t = jnp.stack([w.T for w in wh_list], axis=0).astype(weight_dtype)
        bh_t = jnp.stack(bh_list, axis=0).reshape(L, hidden_size, 1)
    else:
        wh_t = jnp.zeros((0, hidden_size, hidden_size), weight_dtype)
        bh_t = jnp.zeros((0, hidden_size, 1), jnp.float32)

    return dict(
        w0_t=w0.T.astype(weight_dtype),                          # (H, P)
        b0_t=b0.reshape(hidden_size, 1),                         # (H, 1) f32
        wh_t=wh_t,                                               # (L, H, H)
        bh_t=bh_t,                                               # (L, H, 1) f32
        wo_col=wo.reshape(hidden_size, 1).astype(jnp.float32),   # (H, 1) f32
        bo=bo.reshape(1, 1),                                     # (1, 1) f32 -> SMEM
    )


def patch_mlp_discriminator_1d(x, params, *, num_patches, patch_size,
                               negative_slope=0.2):
    """Forward pass. x: (batch, seq_len) f32 -> (batch, num_patches) f32."""
    batch, seq_len = x.shape
    assert seq_len % patch_size == 0, \
        "Sequence length must be divisible by the patch size"
    assert seq_len == num_patches * patch_size

    M = batch * num_patches
    hidden = params["w0_t"].shape[0]
    L = int(params["wh_t"].shape[0])
    wdt = params["w0_t"].dtype
    ew_dtype = _elementwise_dtype(wdt)

    tile_m, m_pad = _choose_tile(M, hidden)
    grid = (m_pad // tile_m,)

    # Lane-dense input: patch rows -> lanes, features -> sublanes.  Cast to the
    # matmul dtype BEFORE the transpose/pad (halves the transpose traffic); the
    # whole producer chain is offered to XLA for fusion into the pallas call.
    x_t = x.astype(wdt).reshape(M, patch_size).T
    if m_pad != M:
        x_t = jnp.pad(x_t, ((0, 0), (0, m_pad - M)))

    b0 = params["b0_t"].astype(ew_dtype)
    bh = params["bh_t"].astype(ew_dtype)

    kernel = _make_kernel(L, negative_slope, ew_dtype)

    in_specs = [
        pl.BlockSpec((patch_size, tile_m), lambda i: (0, i)),   # x tile (pipelined)
        pl.BlockSpec((hidden, patch_size), lambda i: (0, 0)),   # weights resident
        pl.BlockSpec((hidden, 1), lambda i: (0, 0)),
    ]
    operands = [x_t, params["w0_t"], b0]
    if L > 0:  # avoid zero-sized blocks when num_layers == 1
        in_specs += [
            pl.BlockSpec((L, hidden, hidden), lambda i: (0, 0, 0)),
            pl.BlockSpec((L, hidden, 1), lambda i: (0, 0, 0)),
        ]
        operands += [params["wh_t"], bh]
    in_specs += [
        pl.BlockSpec((hidden, 1), lambda i: (0, 0)),            # wo column (f32)
        pl.BlockSpec(memory_space=pltpu.MemorySpace.SMEM),      # bo scalar
    ]
    operands += [params["wo_col"], params["bo"]]
    # TODO(synk): for very large hidden_size/num_layers (resident (L,H,H) stack
    # beyond ~24 MiB, relevant on v7x's 64 MiB VMEM), single-buffer the weight
    # specs (pipeline_mode=pl.Buffered(1)) or stream wh[l] per layer from
    # pl.ANY via pltpu.make_async_copy instead of keeping the stack resident.

    # Advisory cost estimate for XLA scheduling around the custom call.
    flops = int(2 * m_pad * (patch_size * hidden + L * hidden * hidden + hidden))
    bytes_accessed = int(sum(int(op.size) * op.dtype.itemsize for op in operands)
                         + m_pad * 4)
    cost = pl.CostEstimate(flops=flops, transcendentals=0,
                           bytes_accessed=bytes_accessed)

    # VMEM budget: resident weights (double-buffered by default) + pipelined
    # x/out tiles + live activations, clamped well below the physical per-core
    # VMEM (64 MiB on v7x) to leave Mosaic scratch/semaphore headroom.
    weight_bytes = 2 * sum(int(v.size) * v.dtype.itemsize
                           for v in (params["w0_t"], b0, params["wh_t"], bh,
                                     params["wo_col"]))
    tile_bytes = 2 * (patch_size * tile_m * x_t.dtype.itemsize + tile_m * 4)
    act_bytes = 12 * hidden * tile_m
    need = weight_bytes + tile_bytes + act_bytes + (4 << 20)
    try:
        phys = int(pltpu.get_tpu_info().vmem_capacity_bytes)
    except Exception:
        phys = 64 << 20                        # conservative: v7x per-core VMEM
    ceiling = max(16 << 20, phys - (12 << 20))
    vmem_limit = int(min(max(need, 16 << 20), ceiling))

    out_t = pl.pallas_call(
        kernel,
        out_shape=jax.ShapeDtypeStruct((1, m_pad), jnp.float32),
        grid_spec=pltpu.PrefetchScalarGridSpec(
            num_scalar_prefetch=0,
            grid=grid,
            in_specs=in_specs,
            out_specs=pl.BlockSpec((1, tile_m), lambda i: (0, i)),
        ),
        compiler_params=pltpu.CompilerParams(
            dimension_semantics=("parallel",),   # megacore-shardable (v7x)
            vmem_limit_bytes=vmem_limit,
            allow_input_fusion=[True] + [False] * (len(operands) - 1),
        ),
        cost_estimate=cost,
    )(*operands)

    # torch.cat(patch_outputs, dim=1): row-major (batch, num_patches).
    return out_t[0, :M].reshape(batch, num_patches)


def _reference(x, params, *, num_patches, patch_size, negative_slope=0.2):
    """Pure-JAX reference mirroring the kernel's precision (matmul dtype ops,
    f32 accumulation, same elementwise dtype selection)."""
    batch, seq_len = x.shape
    M = batch * num_patches
    wdt = params["w0_t"].dtype
    ew = _elementwise_dtype(wdt)

    def act(acc, b):
        h = acc.astype(ew) + b.reshape(1, -1).astype(ew)
        return jnp.where(h > 0, h, h * negative_slope)

    h = act(jnp.dot(x.reshape(M, patch_size).astype(wdt), params["w0_t"].T,
                    preferred_element_type=jnp.float32), params["b0_t"])
    for l in range(params["wh_t"].shape[0]):
        h = act(jnp.dot(h.astype(wdt), params["wh_t"][l].T,
                        preferred_element_type=jnp.float32), params["bh_t"][l])
    out = (jnp.sum(h.astype(jnp.float32) * params["wo_col"].reshape(1, -1),
                   axis=-1, keepdims=True) + params["bo"][0, 0])
    return out.reshape(batch, num_patches)


if __name__ == "__main__":
    batch = 2
    num_patches = 8
    patch_size = 16
    hidden_size = 32
    seq_len = num_patches * patch_size   # 128

    key = jax.random.PRNGKey(0)
    # bf16 elementwise (v6e/v7x) accumulates a little extra rounding vs the
    # reference's transposed-orientation matmuls -> looser tolerance there.
    tol = 1e-4 if _elementwise_dtype(jnp.bfloat16) == jnp.float32 else 5e-2
    for num_layers in (3, 1):            # also exercises the zero-hidden-layer path
        k_params, k_x, key = jax.random.split(key, 3)
        params = init_params(k_params, num_patches, patch_size, hidden_size,
                             num_layers)
        x = jax.random.normal(k_x, (batch, seq_len), jnp.float32)

        out = patch_mlp_discriminator_1d(
            x, params, num_patches=num_patches, patch_size=patch_size)
        out = jax.block_until_ready(out)

        ref = _reference(x, params, num_patches=num_patches,
                         patch_size=patch_size)
        assert out.shape == (batch, num_patches)
        assert jnp.allclose(out, ref, atol=tol, rtol=tol), (
            f"mismatch vs reference (num_layers={num_layers}), "
            f"max|diff|={float(jnp.max(jnp.abs(out - ref)))}")

    print("KERNEL_OK")
</pallas_src>

<mosaic_0001>
module attributes {stable_mosaic.version = 11 : i64} {
  func.func @kernel(%arg0: i32, %arg1: memref<16x128xbf16, #tpu.memory_space<vmem>>, %arg2: memref<32x16xbf16, #tpu.memory_space<vmem>>, %arg3: memref<32x1xbf16, #tpu.memory_space<vmem>>, %arg4: memref<2x32x32xbf16, #tpu.memory_space<vmem>>, %arg5: memref<2x32x1xbf16, #tpu.memory_space<vmem>>, %arg6: memref<32x1xf32, #tpu.memory_space<vmem>>, %arg7: memref<1x1xf32, #tpu.memory_space<smem>>, %arg8: memref<1x128xf32, #tpu.memory_space<vmem>>) attributes {dimension_semantics = [#tpu.dimension_semantics<parallel>], iteration_bounds = array<i64: 1>, scalar_prefetch = 0 : i64, scratch_operands = 0 : i64, tpu.core_type = #tpu.core_type<tc>, window_params = [{transform_indices = @transform_0, window_bounds = array<i64: 16, 128>}, {pipeline_mode = #tpu.pipeline_mode<synchronous>, transform_indices = @transform_1, window_bounds = array<i64: 32, 16>}, {pipeline_mode = #tpu.pipeline_mode<synchronous>, transform_indices = @transform_2, window_bounds = array<i64: 32, 1>}, {pipeline_mode = #tpu.pipeline_mode<synchronous>, transform_indices = @transform_3, window_bounds = array<i64: 2, 32, 32>}, {pipeline_mode = #tpu.pipeline_mode<synchronous>, transform_indices = @transform_4, window_bounds = array<i64: 2, 32, 1>}, {pipeline_mode = #tpu.pipeline_mode<synchronous>, transform_indices = @transform_5, window_bounds = array<i64: 32, 1>}, {transform_indices = @transform_6, window_bounds = array<i64: 1, 1>}, {transform_indices = @transform_7, window_bounds = array<i64: 1, 128>}]} {
    %c0 = arith.constant 0 : index
    %c0_0 = arith.constant 0 : index
    %0 = vector.load %arg2[%c0, %c0_0] : memref<32x16xbf16, #tpu.memory_space<vmem>>, vector<32x16xbf16>
    %c0_1 = arith.constant 0 : index
    %c0_2 = arith.constant 0 : index
    %1 = vector.load %arg1[%c0_1, %c0_2] : memref<16x128xbf16, #tpu.memory_space<vmem>>, vector<16x128xbf16>
    %cst = arith.constant dense<0.000000e+00> : vector<32x128xf32>
    %2 = tpu.matmul %0, %1, %cst {dimension_numbers = #tpu.dot_dimension_numbers<[1], [0], [0], [1], [0, 0, 1, 1], [], []>} : vector<32x16xbf16>, vector<16x128xbf16>, vector<32x128xf32> -> vector<32x128xf32>
    %c0_3 = arith.constant 0 : index
    %c0_4 = arith.constant 0 : index
    %3 = vector.load %arg3[%c0_3, %c0_4] : memref<32x1xbf16, #tpu.memory_space<vmem>>, vector<32x1xbf16>
    %4 = arith.truncf %2 : vector<32x128xf32> to vector<32x128xbf16>
    %5 = vector.broadcast %3 : vector<32x1xbf16> to vector<32x128xbf16>
    %6 = arith.addf %4, %5 : vector<32x128xbf16>
    %cst_5 = arith.constant 0.000000e+00 : bf16
    %7 = vector.broadcast %cst_5 : bf16 to vector<32x128xbf16>
    %8 = arith.cmpf ogt, %6, %7 : vector<32x128xbf16>
    %cst_6 = arith.constant 2.001950e-01 : bf16
    %9 = vector.broadcast %cst_6 : bf16 to vector<32x128xbf16>
    %10 = arith.mulf %6, %9 : vector<32x128xbf16>
    %11 = arith.select %8, %6, %10 : vector<32x128xi1>, vector<32x128xbf16>
    %c0_7 = arith.constant 0 : index
    %c0_8 = arith.constant 0 : index
    %c0_9 = arith.constant 0 : index
    %12 = vector.load %arg4[%c0_7, %c0_8, %c0_9] : memref<2x32x32xbf16, #tpu.memory_space<vmem>>, vector<1x32x32xbf16>
    %13 = vector.shape_cast %12 : vector<1x32x32xbf16> to vector<32x32xbf16>
    %cst_10 = arith.constant dense<0.000000e+00> : vector<32x128xf32>
    %14 = tpu.matmul %13, %11, %cst_10 {dimension_numbers = #tpu.dot_dimension_numbers<[1], [0], [0], [1], [0, 0, 1, 1], [], []>} : vector<32x32xbf16>, vector<32x128xbf16>, vector<32x128xf32> -> vector<32x128xf32>
    %c0_11 = arith.constant 0 : index
    %c0_12 = arith.constant 0 : index
    %c0_13 = arith.constant 0 : index
    %15 = vector.load %arg5[%c0_11, %c0_12, %c0_13] : memref<2x32x1xbf16, #tpu.memory_space<vmem>>, vector<1x32x1xbf16>
    %16 = vector.shape_cast %15 : vector<1x32x1xbf16> to vector<32x1xbf16>
    %17 = arith.truncf %14 : vector<32x128xf32> to vector<32x128xbf16>
    %18 = vector.broadcast %16 : vector<32x1xbf16> to vector<32x128xbf16>
    %19 = arith.addf %17, %18 : vector<32x128xbf16>
    %cst_14 = arith.constant 0.000000e+00 : bf16
    %20 = vector.broadcast %cst_14 : bf16 to vector<32x128xbf16>
    %21 = arith.cmpf ogt, %19, %20 : vector<32x128xbf16>
    %cst_15 = arith.constant 2.001950e-01 : bf16
    %22 = vector.broadcast %cst_15 : bf16 to vector<32x128xbf16>
    %23 = arith.mulf %19, %22 : vector<32x128xbf16>
    %24 = arith.select %21, %19, %23 : vector<32x128xi1>, vector<32x128xbf16>
    %c1 = arith.constant 1 : index
    %c0_16 = arith.constant 0 : index
    %c0_17 = arith.constant 0 : index
    %25 = vector.load %arg4[%c1, %c0_16, %c0_17] : memref<2x32x32xbf16, #tpu.memory_space<vmem>>, vector<1x32x32xbf16>
    %26 = vector.shape_cast %25 : vector<1x32x32xbf16> to vector<32x32xbf16>
    %cst_18 = arith.constant dense<0.000000e+00> : vector<32x128xf32>
    %27 = tpu.matmul %26, %24, %cst_18 {dimension_numbers = #tpu.dot_dimension_numbers<[1], [0], [0], [1], [0, 0, 1, 1], [], []>} : vector<32x32xbf16>, vector<32x128xbf16>, vector<32x128xf32> -> vector<32x128xf32>
    %c1_19 = arith.constant 1 : index
    %c0_20 = arith.constant 0 : index
    %c0_21 = arith.constant 0 : index
    %28 = vector.load %arg5[%c1_19, %c0_20, %c0_21] : memref<2x32x1xbf16, #tpu.memory_space<vmem>>, vector<1x32x1xbf16>
    %29 = vector.shape_cast %28 : vector<1x32x1xbf16> to vector<32x1xbf16>
    %30 = arith.truncf %27 : vector<32x128xf32> to vector<32x128xbf16>
    %31 = vector.broadcast %29 : vector<32x1xbf16> to vector<32x128xbf16>
    %32 = arith.addf %30, %31 : vector<32x128xbf16>
    %cst_22 = arith.constant 0.000000e+00 : bf16
    %33 = vector.broadcast %cst_22 : bf16 to vector<32x128xbf16>
    %34 = arith.cmpf ogt, %32, %33 : vector<32x128xbf16>
    %cst_23 = arith.constant 2.001950e-01 : bf16
    %35 = vector.broadcast %cst_23 : bf16 to vector<32x128xbf16>
    %36 = arith.mulf %32, %35 : vector<32x128xbf16>
    %37 = arith.select %34, %32, %36 : vector<32x128xi1>, vector<32x128xbf16>
    %c0_24 = arith.constant 0 : index
    %c0_25 = arith.constant 0 : index
    %38 = vector.load %arg6[%c0_24, %c0_25] : memref<32x1xf32, #tpu.memory_space<vmem>>, vector<32x1xf32>
    %39 = arith.extf %37 : vector<32x128xbf16> to vector<32x128xf32>
    %40 = vector.broadcast %38 : vector<32x1xf32> to vector<32x128xf32>
    %41 = arith.mulf %40, %39 : vector<32x128xf32>
    %cst_26 = arith.constant dense<0.000000e+00> : vector<128xf32>
    %42 = vector.multi_reduction <add>, %41, %cst_26 [0] : vector<32x128xf32> to vector<128xf32>
    %43 = vector.shape_cast %42 : vector<128xf32> to vector<1x128xf32>
    %c0_27 = arith.constant 0 : index
    %c0_28 = arith.constant 0 : index
    %44 = memref.load %arg7[%c0_27, %c0_28] : memref<1x1xf32, #tpu.memory_space<smem>>
    %45 = vector.broadcast %44 : f32 to vector<1x128xf32>
    %46 = arith.addf %43, %45 : vector<1x128xf32>
    %c0_29 = arith.constant 0 : index
    %c0_30 = arith.constant 0 : index
    %47 = vector.load %arg8[%c0_29, %c0_30] : memref<1x128xf32, #tpu.memory_space<vmem>>, vector<1x128xf32>
    tpu.vector_store %arg8[%c0_29, %c0_30], %46 {strides = array<i32>} : memref<1x128xf32, #tpu.memory_space<vmem>>, vector<1x128xf32>,
    return
  }
  func.func @transform_0(%arg0: i32) -> (i32, i32) {
    %c0_i32 = arith.constant 0 : i32
    %c0_i32_0 = arith.constant 0 : i32
    return %c0_i32, %arg0 : i32, i32
  }
  func.func @transform_1(%arg0: i32) -> (i32, i32) {
    %c0_i32 = arith.constant 0 : i32
    %c0_i32_0 = arith.constant 0 : i32
    %c0_i32_1 = arith.constant 0 : i32
    return %c0_i32, %c0_i32_0 : i32, i32
  }
  func.func @transform_2(%arg0: i32) -> (i32, i32) {
    %c0_i32 = arith.constant 0 : i32
    %c0_i32_0 = arith.constant 0 : i32
    %c0_i32_1 = arith.constant 0 : i32
    return %c0_i32, %c0_i32_0 : i32, i32
  }
  func.func @transform_3(%arg0: i32) -> (i32, i32, i32) {
    %c0_i32 = arith.constant 0 : i32
    %c0_i32_0 = arith.constant 0 : i32
    %c0_i32_1 = arith.constant 0 : i32
    %c0_i32_2 = arith.constant 0 : i32
    return %c0_i32, %c0_i32_0, %c0_i32_1 : i32, i32, i32
  }
  func.func @transform_4(%arg0: i32) -> (i32, i32, i32) {
    %c0_i32 = arith.constant 0 : i32
    %c0_i32_0 = arith.constant 0 : i32
    %c0_i32_1 = arith.constant 0 : i32
    %c0_i32_2 = arith.constant 0 : i32
    return %c0_i32, %c0_i32_0, %c0_i32_1 : i32, i32, i32
  }
  func.func @transform_5(%arg0: i32) -> (i32, i32) {
    %c0_i32 = arith.constant 0 : i32
    %c0_i32_0 = arith.constant 0 : i32
    %c0_i32_1 = arith.constant 0 : i32
    return %c0_i32, %c0_i32_0 : i32, i32
  }
  func.func @transform_6(%arg0: i32) -> (i32, i32) {
    %c0_i32 = arith.constant 0 : i32
    %c0_i32_0 = arith.constant 0 : i32
    %c0_i32_1 = arith.constant 0 : i32
    return %c0_i32, %c0_i32_0 : i32, i32
  }
  func.func @transform_7(%arg0: i32) -> (i32, i32) {
    %c0_i32 = arith.constant 0 : i32
    %c0_i32_0 = arith.constant 0 : i32
    return %c0_i32, %arg0 : i32, i32
  }
}

</mosaic_0001>

<bundles_post_ra>
// kernel: tpu_custom_call.1
= control target key start
LH: loop header
LB: loop body
LE: loop exit
PB: predicated region body
PF: predicated region fallthrough
CT: control target
= control target key end

     0   :  { %v578_v3 = vmov 0   ;;  %vm51_vm0 = vcmask 130048   ;;  %s714_s0 = inlined_call_operand.vmem [shape: bf16[16,128], index: 0, kind: input, shape index: {}]   ;;  %s715_s1 = inlined_call_operand.vmem [shape: bf16[32,16], index: 1, kind: input, shape index: {}]   ;;  %s716_s2 = inlined_call_operand.vmem [shape: bf16[32,1], index: 2, kind: input, shape index: {}]   ;;  %s717_s3 = inlined_call_operand.vmem [shape: bf16[2,32,32], index: 3, kind: input, shape index: {}]   ;;  %s718_s4 = inlined_call_operand.vmem [shape: bf16[2,32,1], index: 4, kind: input, shape index: {}]   ;;  %s719_s5 = inlined_call_operand.vmem [shape: f32[32,1], index: 5, kind: input, shape index: {}]   ;;  %s720_s6 = inlined_call_operand.<no memory space> [shape: f32[1,1], index: 6, kind: input, shape index: {}]   ;;  %s721_s7 = inlined_call_operand.hbm [shape: f32[1,128], index: 7, kind: output, shape index: {}]  }
   0x1   :  { %v79_v0 = vld [vmem:[%s716_s2 + $0x8] sm:$0xf]  ;;  %v539_v1 = vld [vmem:[%s714_s0] sm:$0xff]  ;;  %549 = vset.pattern.permute.xlu0 %v578_v3  ;;  %550 = vset.pattern.permute.xlu1 %v578_v3 }
   0x2   :  { %v77_v2 = vld [vmem:[%s716_s2] sm:$0xf]  ;;  %105 = vperm.xlu0 %549, %v79_v0   ;;  %65 = vmatpush.bf16.msra.mxu0 %v539_v1 }
   0x3   :  { %v537_v4 = vld [vmem:[%s715_s1] sm:$0xff]  ;;  %87 = vperm.xlu1 %550, %v77_v2   ;;  %551 = vset.pattern.permute.xlu2 %v578_v3 }
   0x4   :  { %13 = vsyncpa [#allocation4], 0  ;;  %v80_v5 = vld [vmem:[%s716_s2 + $0xc] sm:$0xf]  ;;  %v78_v6 = vld [vmem:[%s716_s2 + $0x4] sm:$0xf] }
   0x5   :  { %507 = vmatmul.msk.bf16.vlgmr.msra.gmra.mxu0 %vm51_vm0, %v537_v4  ;;  %v213_v7 = vld [vmem:[%s718_s4] sm:$0xf]  ;;  %v214_v8 = vld [vmem:[%s718_s4 + $0x4] sm:$0xf]  ;;  %v538_v9 = vld [vmem:[%s715_s1 + $0x8] sm:$0xff]  ;;  %vm187_vm9 = vcmask 261120  }
   0x6   :  { %v534_v10 = vld [vmem:[%s718_s4 + $0x14] sm:$0xf]  ;;  %v535_v11 = vld [vmem:[%s718_s4 + $0x18] sm:$0xf]  ;;  %v434_v12 = vld [vmem:[%s719_s5] sm:$0xff]  ;;  %s580_s19 = smov [#allocation3]  }
   0x7   :  { %v435_v13 = vld [vmem:[%s719_s5 + $0x8] sm:$0xff]  ;;  %v437_v14 = vld [vmem:[%s719_s5 + $0x18] sm:$0xff]  ;;  %v579_v17 = vmov 839922192   ;;  %v533_v60 = vld [vmem:[%s718_s4 + $0x10] sm:$0xf] }
   0x8   :  { %v91_v18 = vunpack.c.l.s4 %v579_v17  ;;  %v215_v37 = vld [vmem:[%s718_s4 + $0x8] sm:$0xf]  ;;  %v216_v48 = vld [vmem:[%s718_s4 + $0xc] sm:$0xf]  ;;  %s484_s2 = sshll.u32 %s580_s19, 4  ;;  %s486_s22 = sshll.u32 %s721_s7, 4  ;;  %s485_s2 = int_to_ptr.vmem [resolvable:$true] %s484_s2  ;;  %s487_s22 = int_to_ptr.hbm [resolvable:$true] %s486_s22 }
   0x9   :  { %241 = vperm.xlu2 %551, %v215_v37  }
   0xa   :  { %114 = vperm.xlu0 %549, %v80_v5   ;;  %v663_v20 = vunpack.c.0.s8 %v91_v18 }
   0xb   :  { %96 = vperm.xlu1 %550, %v78_v6  }
  0x11   :  { %250 = vperm.xlu2 %551, %v216_v48  }
  0x12   :  { %223 = vperm.xlu0 %549, %v213_v7  }
  0x13   :  { %232 = vperm.xlu1 %550, %v214_v8  }
  0x15   :  { %508 = vmatmul.msk.bf16.gmra.mxu0 %vm51_vm0, %v538_v9  ;;  %v536_v9 = vld [vmem:[%s718_s4 + $0x1c] sm:$0xf] }
  0x19   :  { %360 = vperm.xlu2 %551, %v533_v60  }
  0x1a   :  { %369 = vperm.xlu0 %549, %v534_v10  }
  0x1b   :  { %378 = vperm.xlu1 %550, %v535_v11  }
  0x21   :  { %387 = vperm.xlu2 %551, %v536_v9  }
  0x22   :  { %444 = vperm.xlu0 %549, %v434_v12   ;;  %v540_v12 = vld [vmem:[%s717_s3] sm:$0xff] }
  0x23   :  { %449 = vperm.xlu1 %550, %v435_v13   ;;  %v541_v13 = vld [vmem:[%s717_s3 + $0x8] sm:$0xff] }
  0x2a   :  { %459 = vperm.xlu0 %549, %v437_v14   ;;  %v436_v14 = vld [vmem:[%s719_s5 + $0x10] sm:$0xff] }
  0x2b   :  { %454 = vperm.xlu2 %551, %v436_v14  }
  0x74   :  { %v106_v24 = vpop.permute.xlu0 %105 }
  0x75   :  { %v88_v15 = vpop.permute.xlu1 %87  ;;  %v111_v25 = vperm.slane %v106_v24, %v663_v20 }
  0x76   :  { %v93_v26 = vperm.slane %v88_v15, %v663_v20 }
  0x77   :  { %v127_v31 = vunpack.c.l.bf16 %v111_v25 }
  0x78   :  { %v125_v32 = vunpack.c.l.bf16 %v93_v26 }
  0x7c   :  { %v115_v40 = vpop.permute.xlu0 %114 }
  0x7d   :  { %v97_v21 = vpop.permute.xlu1 %96  ;;  %v120_v41 = vperm.slane %v115_v40, %v663_v20 }
  0x7e   :  { %v102_v22 = vperm.slane %v97_v21, %v663_v20 }
  0x7f   :  { %v128_v49 = vunpack.c.l.bf16 %v120_v41 }
  0x80   :  { %v126_v28 = vunpack.c.l.bf16 %v102_v22 }
  0x82   :  { %v67_v16 = vpop.f32.mrf.mxu0 }
  0x83   :  { %v81_v27 = vpack.c.bf16 %v67_v16, %v67_v16  ;;  %v242_v16 = vpop.permute.xlu2 %241 }
  0x84   :  { %v247_v17 = vperm.slane %v242_v16, %v663_v20 }
  0x85   :  { %v121_v33 = vunpack.c.l.bf16 %v81_v27  ;;  %v233_v22 = vpop.permute.xlu1 %232 }
  0x86   :  { %v238_v24 = vperm.slane %v233_v22, %v663_v20  ;;  %v263_v25 = vunpack.c.l.bf16 %v247_v17 }
  0x87   :  { %v129_v38 = vadd.f32 %v125_v32, %v121_v33 }
  0x88   :  { %v262_v32 = vunpack.c.l.bf16 %v238_v24 }
  0x89   :  { %v133_v45 = vpack.c.bf16 %v129_v38, %v129_v38 }
  0x8a   :  { %v69_v19 = vpop.f32.mrf.mxu0 }
  0x8b   :  { %v82_v23 = vpack.c.bf16 %v69_v19, %v69_v19  ;;  %v137_v52 = vunpack.c.l.bf16 %v133_v45  ;;  %v224_v19 = vpop.permute.xlu0 %223 }
  0x8c   :  { %v229_v21 = vperm.slane %v224_v19, %v663_v20 }
  0x8d   :  { %v122_v29 = vunpack.c.l.bf16 %v82_v23  ;;  %v145_v57 = vmul.f32 0.20019531, %v137_v52  ;;  %vm141_vm5 = vcmp.gt.f32.partialorder %v137_v52, 0.0 }
  0x8e   :  { %vm153_vm8 = vmpackc.low %vm141_vm5, %vm141_vm5 }
  0x8f   :  { %v130_v35 = vadd.f32 %v126_v28, %v122_v29  ;;  %v149_v63 = vpack.c.bf16 %v145_v57, %v145_v57  ;;  %v261_v29 = vunpack.c.l.bf16 %v229_v21 }
  0x91   :  { %v134_v42 = vpack.c.bf16 %v130_v35, %v130_v35  ;;  %v157_v6 = vsel %vm153_vm8, %v133_v45, %v149_v63 }
  0x92   :  { %v72_v30 = vpop.f32.mrf.mxu0  ;;  %v179_v10 = vunpack.c.l.b16 %v157_v6  ;;  %v542_v6 = vld [vmem:[%s717_s3 + $0x10] sm:$0xff] }
  0x93   :  { %v83_v34 = vpack.c.bf16 %v72_v30, %v72_v30  ;;  %v138_v50 = vunpack.c.l.bf16 %v134_v42 }
  0x95   :  { %v123_v36 = vunpack.c.l.bf16 %v83_v34  ;;  %v146_v55 = vmul.f32 0.20019531, %v138_v50  ;;  %vm142_vm2 = vcmp.gt.f32.partialorder %v138_v50, 0.0 }
  0x96   :  { %vm154_vm6 = vmpackc.low %vm142_vm2, %vm142_vm2 }
  0x97   :  { %v131_v39 = vadd.f32 %v127_v31, %v123_v36  ;;  %v150_v61 = vpack.c.bf16 %v146_v55, %v146_v55  ;;  %v251_v36 = vpop.permute.xlu2 %250 }
  0x98   :  { %v256_v37 = vperm.slane %v251_v36, %v663_v20 }
  0x99   :  { %v135_v43 = vpack.c.bf16 %v131_v39, %v131_v39  ;;  %v158_v3 = vsel %vm154_vm6, %v134_v42, %v150_v61 }
  0x9a   :  { %v74_v44 = vpop.f32.mrf.mxu0  ;;  %v180_v8 = vunpack.c.l.b16 %v158_v3  ;;  %v264_v45 = vunpack.c.l.bf16 %v256_v37 }
  0x9b   :  { %v139_v46 = vunpack.c.l.bf16 %v135_v43  ;;  %v84_v47 = vpack.c.bf16 %v74_v44, %v74_v44 }
  0x9c   :  { %v183_v11 = vpack.c.b16 %v180_v8, %v179_v10 }
  0x9d   :  { %v124_v51 = vunpack.c.l.bf16 %v84_v47  ;;  %v147_v53 = vmul.f32 0.20019531, %v139_v46  ;;  %vm143_vm1 = vcmp.gt.f32.partialorder %v139_v46, 0.0 }
  0x9e   :  { %vm155_vm4 = vmpackc.low %vm143_vm1, %vm143_vm1 }
  0x9f   :  { %v132_v54 = vadd.f32 %v128_v49, %v124_v51  ;;  %v151_v58 = vpack.c.bf16 %v147_v53, %v147_v53  ;;  %v361_v10 = vpop.permute.xlu2 %360 }
  0xa1   :  { %v136_v56 = vpack.c.bf16 %v132_v54, %v132_v54  ;;  %v159_v1 = vsel %vm155_vm4, %v135_v43, %v151_v58 }
  0xa2   :  { %v181_v4 = vunpack.c.l.b16 %v159_v1 }
  0xa3   :  { %v140_v59 = vunpack.c.l.bf16 %v136_v56 }
  0xa5   :  { %v148_v62 = vmul.f32 0.20019531, %v140_v59  ;;  %vm144_vm3 = vcmp.gt.f32.partialorder %v140_v59, 0.0 }
  0xa6   :  { %vm156_vm7 = vmpackc.low %vm144_vm3, %vm144_vm3 }
  0xa7   :  { %v152_v0 = vpack.c.bf16 %v148_v62, %v148_v62 }
  0xa9   :  { %v160_v2 = vsel %vm156_vm7, %v136_v56, %v152_v0 }
  0xaa   :  { %v182_v5 = vunpack.c.l.b16 %v160_v2 }
  0xac   :  { %v184_v7 = vpack.c.b16 %v182_v5, %v181_v4 }
  0xae   :  { %200 = vmatpush.bf16.msra.mxu1 %v184_v7  ;;  %544 = vmatpush.bf16.msra.mxu3 %v184_v7  ;;  %v543_v7 = vld [vmem:[%s717_s3 + $0x18] sm:$0xff] }
  0xb2   :  { %201 = vmatpush.bf16.msra.mxu1 %v183_v11  ;;  %545 = vmatpush.bf16.msra.mxu3 %v183_v11  ;;  %v366_v11 = vperm.slane %v361_v10, %v663_v20 }
  0xb4   :  { %v398_v16 = vunpack.c.l.bf16 %v366_v11 }
  0xb5   :  { %517 = vmatmul.msk.bf16.vlgmr.msra.gmra.mxu1 %vm187_vm9, %v540_v12  ;;  %518 = vmatmul.msk.bf16.vlgmr.msra.gmra.mxu3 %vm187_vm9, %v541_v13  ;;  %v370_v12 = vpop.permute.xlu0 %369 }
  0xb6   :  { %v375_v13 = vperm.slane %v370_v12, %v663_v20  ;;  %v476_v12 = vstv %s720_s6 }
 0x132   :  { %v203_v15 = vpop.f32.mrf.mxu1 }
 0x133   :  { %v217_v18 = vpack.c.bf16 %v203_v15, %v203_v15 }
 0x135   :  { %v257_v26 = vunpack.c.l.bf16 %v217_v18  ;;  %v399_v18 = vunpack.c.l.bf16 %v375_v13 }
 0x137   :  { %v265_v33 = vadd.f32 %v261_v29, %v257_v26 }
 0x138   :  { %v208_v23 = vpop.f32.mrf.mxu3 }
 0x139   :  { %v219_v27 = vpack.c.bf16 %v208_v23, %v208_v23  ;;  %v269_v41 = vpack.c.bf16 %v265_v33, %v265_v33  ;;  %v379_v23 = vpop.permute.xlu1 %378  ;;  %v388_v33 = vpop.permute.xlu2 %387 }
 0x13a   :  { %v205_v28 = vpop.f32.mrf.mxu1  ;;  %v384_v24 = vperm.slane %v379_v23, %v663_v20  ;;  %v393_v36 = vperm.slane %v388_v33, %v663_v20  ;;  %v445_v20 = vpop.permute.xlu0 %444 }
 0x13b   :  { %v259_v30 = vunpack.c.l.bf16 %v219_v27  ;;  %v218_v31 = vpack.c.bf16 %v205_v28, %v205_v28  ;;  %v273_v48 = vunpack.c.l.bf16 %v269_v41 }
 0x13d   :  { %v267_v34 = vadd.f32 %v263_v25, %v259_v30  ;;  %v258_v35 = vunpack.c.l.bf16 %v218_v31  ;;  %v281_v53 = vmul.f32 0.20019531, %v273_v48  ;;  %vm277_vm14 = vcmp.gt.f32.partialorder %v273_v48, 0.0 }
 0x13e   :  { %vm289_vm1 = vmpackc.low %vm277_vm14, %vm277_vm14  ;;  %v400_v30 = vunpack.c.l.bf16 %v384_v24 }
 0x13f   :  { %v271_v38 = vpack.c.bf16 %v267_v34, %v267_v34  ;;  %v266_v39 = vadd.f32 %v262_v32, %v258_v35  ;;  %v285_v58 = vpack.c.bf16 %v281_v53, %v281_v53 }
 0x140   :  { %v210_v40 = vpop.f32.mrf.mxu3 }
 0x141   :  { %v275_v42 = vunpack.c.l.bf16 %v271_v38  ;;  %v270_v43 = vpack.c.bf16 %v266_v39, %v266_v39  ;;  %v220_v44 = vpack.c.bf16 %v210_v40, %v210_v40  ;;  %v293_v1 = vsel %vm289_vm1, %v269_v41, %v285_v58 }
 0x142   :  { %v316_v4 = vunpack.c.l.b16 %v293_v1 }
 0x143   :  { %v274_v46 = vunpack.c.l.bf16 %v270_v43  ;;  %v260_v47 = vunpack.c.l.bf16 %v220_v44  ;;  %v283_v50 = vmul.f32 0.20019531, %v275_v42  ;;  %vm279_vm10 = vcmp.gt.f32.partialorder %v275_v42, 0.0 }
 0x144   :  { %vm291_vm13 = vmpackc.low %vm279_vm10, %vm279_vm10 }
 0x145   :  { %v268_v49 = vadd.f32 %v264_v45, %v260_v47  ;;  %v282_v51 = vmul.f32 0.20019531, %v274_v46  ;;  %v287_v55 = vpack.c.bf16 %v283_v50, %v283_v50  ;;  %vm278_vm11 = vcmp.gt.f32.partialorder %v274_v46, 0.0 }
 0x146   :  { %vm290_vm15 = vmpackc.low %vm278_vm11, %vm278_vm11 }
 0x147   :  { %v272_v52 = vpack.c.bf16 %v268_v49, %v268_v49  ;;  %v286_v56 = vpack.c.bf16 %v282_v51, %v282_v51  ;;  %v295_v60 = vsel %vm291_vm13, %v271_v38, %v287_v55 }
 0x148   :  { %v318_v63 = vunpack.c.l.b16 %v295_v60  ;;  %v455_v60 = vpop.permute.xlu2 %454 }
 0x149   :  { %v276_v54 = vunpack.c.l.bf16 %v272_v52  ;;  %v294_v62 = vsel %vm290_vm15, %v270_v43, %v286_v56  ;;  %v401_v43 = vunpack.c.l.bf16 %v393_v36 }
 0x14a   :  { %v317_v3 = vunpack.c.l.b16 %v294_v62 }
 0x14b   :  { %v284_v57 = vmul.f32 0.20019531, %v276_v54  ;;  %vm280_vm12 = vcmp.gt.f32.partialorder %v276_v54, 0.0 }
 0x14c   :  { %vm292_vm0 = vmpackc.low %vm280_vm12, %vm280_vm12  ;;  %v320_v5 = vpack.c.b16 %v317_v3, %v316_v4  ;;  %v460_v3 = vpop.permute.xlu0 %459 }
 0x14d   :  { %v288_v59 = vpack.c.bf16 %v284_v57, %v284_v57  ;;  %v450_v57 = vpop.permute.xlu1 %449 }
 0x14f   :  { %v296_v61 = vsel %vm292_vm0, %v272_v52, %v288_v59 }
 0x150   :  { %v319_v0 = vunpack.c.l.b16 %v296_v61 }
 0x152   :  { %v321_v2 = vpack.c.b16 %v319_v0, %v318_v63 }
 0x154   :  { %336 = vmatpush.bf16.msra.mxu2 %v321_v2 }
 0x158   :  { %337 = vmatpush.bf16.msra.mxu2 %v320_v5 }
 0x15b   :  { %531 = vmatmul.msk.bf16.vlgmr.msra.gmra.mxu2 %vm187_vm9, %v542_v6 }
 0x16b   :  { %532 = vmatmul.msk.bf16.gmra.mxu2 %vm187_vm9, %v543_v7 }
 0x1de   :  { %v339_v8 = vpop.f32.mrf.mxu2 }
 0x1df   :  { %v354_v9 = vpack.c.bf16 %v339_v8, %v339_v8 }
 0x1e1   :  { %v394_v14 = vunpack.c.l.bf16 %v354_v9 }
 0x1e3   :  { %v402_v19 = vadd.f32 %v398_v16, %v394_v14 }
 0x1e5   :  { %v406_v25 = vpack.c.bf16 %v402_v19, %v402_v19 }
 0x1e6   :  { %v341_v15 = vpop.f32.mrf.mxu2 }
 0x1e7   :  { %v355_v17 = vpack.c.bf16 %v341_v15, %v341_v15  ;;  %v410_v31 = vunpack.c.l.bf16 %v406_v25 }
 0x1e9   :  { %v395_v21 = vunpack.c.l.bf16 %v355_v17  ;;  %v418_v37 = vmul.f32 0.20019531, %v410_v31  ;;  %vm414_vm3 = vcmp.gt.f32.partialorder %v410_v31, 0.0 }
 0x1ea   :  { %vm426_vm6 = vmpackc.low %vm414_vm3, %vm414_vm3 }
 0x1eb   :  { %v403_v22 = vadd.f32 %v399_v18, %v395_v21  ;;  %v422_v44 = vpack.c.bf16 %v418_v37, %v418_v37 }
 0x1ed   :  { %v407_v26 = vpack.c.bf16 %v403_v22, %v403_v22  ;;  %v430_v50 = vsel %vm426_vm6, %v406_v25, %v422_v44 }
 0x1ee   :  { %v344_v27 = vpop.f32.mrf.mxu2  ;;  %v438_v55 = vunpack.c.l.bf16 %v430_v50 }
 0x1ef   :  { %v411_v28 = vunpack.c.l.bf16 %v407_v26  ;;  %v356_v29 = vpack.c.bf16 %v344_v27, %v344_v27 }
 0x1f0   :  { %v462_v62 = vmul.f32 %v445_v20, %v438_v55 }
 0x1f1   :  { %v396_v32 = vunpack.c.l.bf16 %v356_v29  ;;  %v419_v34 = vmul.f32 0.20019531, %v411_v28  ;;  %vm415_vm2 = vcmp.gt.f32.partialorder %v411_v28, 0.0 }
 0x1f2   :  { %vm427_vm5 = vmpackc.low %vm415_vm2, %vm415_vm2 }
 0x1f3   :  { %v404_v35 = vadd.f32 %v400_v30, %v396_v32  ;;  %v423_v40 = vpack.c.bf16 %v419_v34, %v419_v34 }
 0x1f5   :  { %v408_v38 = vpack.c.bf16 %v404_v35, %v404_v35  ;;  %v431_v47 = vsel %vm427_vm5, %v407_v26, %v423_v40 }
 0x1f6   :  { %v346_v39 = vpop.f32.mrf.mxu2  ;;  %v439_v53 = vunpack.c.l.bf16 %v431_v47 }
 0x1f7   :  { %v412_v41 = vunpack.c.l.bf16 %v408_v38  ;;  %v357_v42 = vpack.c.bf16 %v346_v39, %v346_v39 }
 0x1f8   :  { %v463_v59 = vmul.f32 %v450_v57, %v439_v53 }
 0x1f9   :  { %vm416_vm4 = vcmp.gt.f32.partialorder %v412_v41, 0.0  ;;  %v420_v45 = vmul.f32 0.20019531, %v412_v41  ;;  %v397_v46 = vunpack.c.l.bf16 %v357_v42 }
 0x1fa   :  { %vm428_vm7 = vmpackc.low %vm416_vm4, %vm416_vm4  ;;  %v466_v1 = vadd.f32 %v463_v59, %v462_v62 }
 0x1fb   :  { %v424_v48 = vpack.c.bf16 %v420_v45, %v420_v45  ;;  %v405_v49 = vadd.f32 %v401_v43, %v397_v46 }
 0x1fd   :  { %v432_v51 = vsel %vm428_vm7, %v408_v38, %v424_v48  ;;  %v409_v52 = vpack.c.bf16 %v405_v49, %v405_v49 }
 0x1fe   :  { %v440_v56 = vunpack.c.l.bf16 %v432_v51 }
 0x1ff   :  { %v413_v54 = vunpack.c.l.bf16 %v409_v52 }
 0x200   :  { %v464_v63 = vmul.f32 %v455_v60, %v440_v56 }
 0x201   :  { %vm417_vm8 = vcmp.gt.f32.partialorder %v413_v54, 0.0  ;;  %v421_v58 = vmul.f32 0.20019531, %v413_v54 }
 0x202   :  { %vm429_vm9 = vmpackc.low %vm417_vm8, %vm417_vm8  ;;  %v467_v4 = vadd.f32 %v466_v1, %v464_v63 }
 0x203   :  { %v425_v61 = vpack.c.bf16 %v421_v58, %v421_v58 }
 0x205   :  { %v433_v0 = vsel %vm429_vm9, %v409_v52, %v425_v61 }
 0x206   :  { %v441_v2 = vunpack.c.l.bf16 %v433_v0 }
 0x208   :  { %v465_v5 = vmul.f32 %v460_v3, %v441_v2 }
 0x20a   :  { %v468_v6 = vadd.f32 %v467_v4, %v465_v5 }
 0x20c   :  { %v469_v7 = vrot.slane %v468_v6, 4 }
 0x20e   :  { %v470_v8 = vadd.f32 %v469_v7, %v468_v6 }
 0x210   :  { %v471_v9 = vrot.slane %v470_v8, 2 }
 0x212   :  { %v472_v10 = vadd.f32 %v471_v9, %v470_v8 }
 0x214   :  { %v473_v11 = vrot.slane %v472_v10, 1 }
 0x216   :  { %v474_v13 = vadd.f32 %v473_v11, %v472_v10 }
 0x218   :  { %v477_v14 = vadd.f32 %v476_v12, %v474_v13 }
 0x21a   :  { %478 = vst [vmem:[#allocation3] sm:$0x1] %v477_v14 }
 0x21b   :  { %489 = dma.vmem_to_hbm [thread:$0]  %s485_s2, 16, %s487_s22, [#allocation4]  }
 0x21c   :  { %576 = dma.done.wait [#allocation4], 16  }
 0x21d   :  { %577 = vsyncadd [#allocation4], 4294967280 }
 0x21e   :  { %494 = vsyncpa [#allocation4], 1 }

</bundles_post_ra>
